<compile_context>
chip_gen: v5e
topology: v5e:2x2
jax: 0.10.0
libtpu: 0.0.40
codegen_flags: <defaults>
</compile_context>

<pallas_src>
import functools

import jax
import jax.numpy as jnp
from jax import lax
from jax.experimental import pallas as pl
from jax.experimental.pallas import tpu as pltpu


def _lstm_kernel(x_ref, wih_ref, whh_ref, b_ref, wlin_ref, blin_ref,
                 h0_ref, c0_ref,                 # inputs
                 out_ref, hn_ref, cn_ref,        # outputs
                 gx_ref,                         # VMEM scratch (T*B, 4H)
                 *, T, B, H):
    """Single-layer LSTM recurrence + final-step linear head, all in VMEM."""
    # ---- Hoisted, loop-invariant loads (read VMEM once, keep in vregs). ----
    whh = whh_ref[...]                                    # (H, 4H)

    # ---- Hoisted input projection for the whole sequence:
    #      (T*B, E) @ (E, 4H) in one MXU pass, biases pre-summed. ----
    gx_ref[...] = (jnp.dot(x_ref[...], wih_ref[...],
                           preferred_element_type=jnp.float32)
                   + b_ref[...])

    h0 = h0_ref[...]                                      # (B, H)
    c0 = c0_ref[...]                                      # (B, H)

    def step(t, carry):
        h, c = carry
        start = t * B
        if B % 8 == 0:                                    # sublane-aligned slice hint
            start = pl.multiple_of(start, 8)
        gates = gx_ref[pl.ds(start, B), :] + jnp.dot(
            h, whh, preferred_element_type=jnp.float32)   # (B, 4H)
        i = jax.nn.sigmoid(gates[:, 0:H])
        f = jax.nn.sigmoid(gates[:, H:2 * H])
        g = jnp.tanh(gates[:, 2 * H:3 * H])
        o = jax.nn.sigmoid(gates[:, 3 * H:4 * H])
        c_new = f * c + i * g
        h_new = o * jnp.tanh(c_new)
        return (h_new, c_new)

    # Unrolled recurrence: only the h @ W_hh matmul remains on the serial chain.
    h_final, c_final = lax.fori_loop(0, T, step, (h0, c0), unroll=True)

    hn_ref[...] = h_final
    cn_ref[...] = c_final
    # ---- Output head: PyTorch takes lstm_out[:, -1, :] == h_T, so project
    #      only the final hidden state; one matmul + one dense store. ----
    out_ref[...] = (jnp.dot(h_final, wlin_ref[...],
                            preferred_element_type=jnp.float32)
                    + blin_ref[...])


def prepare_params(params):
    """One-time parameter re-arrangement (do NOT redo this per forward call)."""
    H4 = params["w_ih"].shape[0]
    C = params["w_lin"].shape[0]
    return {
        "wih_t": params["w_ih"].T,                                 # (E, 4H)
        "whh_t": params["w_hh"].T,                                 # (H, 4H)
        "b": (params["b_ih"] + params["b_hh"]).reshape(1, H4),     # (1, 4H)
        "wlin_t": params["w_lin"].T,                               # (H, C)
        "blin": params["b_lin"].reshape(1, C),                     # (1, C)
    }


def lstm_model_forward(x, prepared, h0, c0):
    """x: (B, T, E) float32 (batch_first). h0, c0: (B, H).

    Returns (output (B, num_classes), (h_n (1, B, H), c_n (1, B, H))).
    """
    B, T, E = x.shape
    H = prepared["whh_t"].shape[0]
    C = prepared["wlin_t"].shape[1]

    # Time-major, flattened sequence so the whole-sequence input projection is
    # a single 2-D matmul inside the kernel.
    x_tm = jnp.transpose(x, (1, 0, 2)).reshape(T * B, E)

    vmem = pl.BlockSpec(memory_space=pltpu.MemorySpace.VMEM)
    out, h_n, c_n = pl.pallas_call(
        functools.partial(_lstm_kernel, T=T, B=B, H=H),
        out_shape=(
            jax.ShapeDtypeStruct((B, C), jnp.float32),
            jax.ShapeDtypeStruct((B, H), jnp.float32),
            jax.ShapeDtypeStruct((B, H), jnp.float32),
        ),
        in_specs=[vmem] * 8,
        out_specs=(vmem, vmem, vmem),
        scratch_shapes=[pltpu.VMEM((T * B, 4 * H), jnp.float32)],
    )(x_tm, prepared["wih_t"], prepared["whh_t"], prepared["b"],
      prepared["wlin_t"], prepared["blin"], h0, c0)

    # Restore PyTorch hidden-state shapes (num_layers=1, B, H).
    return out, (h_n.reshape(1, B, H), c_n.reshape(1, B, H))


def _reference_forward(x, params, h0, c0):
    """Pure-JAX reference matching torch.nn.LSTM + nn.Linear semantics."""
    H = params["w_hh"].shape[1]

    def step(carry, x_t):
        h, c = carry
        gates = (x_t @ params["w_ih"].T + params["b_ih"]
                 + h @ params["w_hh"].T + params["b_hh"])
        i = jax.nn.sigmoid(gates[:, 0:H])
        f = jax.nn.sigmoid(gates[:, H:2 * H])
        g = jnp.tanh(gates[:, 2 * H:3 * H])
        o = jax.nn.sigmoid(gates[:, 3 * H:4 * H])
        c_new = f * c + i * g
        h_new = o * jnp.tanh(c_new)
        return (h_new, c_new), h_new

    (h_f, c_f), _ = lax.scan(step, (h0, c0), jnp.transpose(x, (1, 0, 2)))
    out = h_f @ params["w_lin"].T + params["b_lin"]
    return out, (h_f, c_f)


# TODO(synk): hook_layers / register_forward_hook is PyTorch-side bookkeeping
# with no kernel equivalent; not translated.

if __name__ == "__main__":
    # Small shapes consistent with the module: input_dim=16, hidden_dim=32,
    # num_classes=16, batch_size=8, sequence length=8.
    input_dim, hidden_dim, num_classes = 16, 32, 16
    batch_size, seq_len = 8, 8

    key = jax.random.PRNGKey(0)
    kx, k1, k2, k3, k4, k5, k6 = jax.random.split(key, 7)

    # PyTorch-style uniform(-1/sqrt(H), 1/sqrt(H)) init; gate order (i, f, g, o).
    s = 1.0 / jnp.sqrt(hidden_dim)
    params = {
        "w_ih": jax.random.uniform(k1, (4 * hidden_dim, input_dim), jnp.float32, -s, s),
        "w_hh": jax.random.uniform(k2, (4 * hidden_dim, hidden_dim), jnp.float32, -s, s),
        "b_ih": jax.random.uniform(k3, (4 * hidden_dim,), jnp.float32, -s, s),
        "b_hh": jax.random.uniform(k4, (4 * hidden_dim,), jnp.float32, -s, s),
        "w_lin": jax.random.uniform(k5, (num_classes, hidden_dim), jnp.float32, -s, s),
        "b_lin": jax.random.uniform(k6, (num_classes,), jnp.float32, -s, s),
    }

    x = jax.random.normal(kx, (batch_size, seq_len, input_dim), jnp.float32)
    h0 = jnp.zeros((batch_size, hidden_dim), jnp.float32)   # init_hidden()
    c0 = jnp.zeros((batch_size, hidden_dim), jnp.float32)

    prepared = prepare_params(params)            # one-time weight re-layout
    forward = jax.jit(lstm_model_forward)        # jit the wrapper + kernel

    out, (h_n, c_n) = forward(x, prepared, h0, c0)
    out, h_n, c_n = jax.block_until_ready((out, h_n, c_n))

    # Correctness check against the pure-JAX reference.
    ref_out, (ref_h, ref_c) = _reference_forward(x, params, h0, c0)
    assert out.shape == (batch_size, num_classes)
    assert h_n.shape == (1, batch_size, hidden_dim)
    assert c_n.shape == (1, batch_size, hidden_dim)
    assert jnp.allclose(out, ref_out, atol=1e-5), "output mismatch"
    assert jnp.allclose(h_n[0], ref_h, atol=1e-5), "h_n mismatch"
    assert jnp.allclose(c_n[0], ref_c, atol=1e-5), "c_n mismatch"

    print("KERNEL_OK")
</pallas_src>

<mosaic_0001>
module attributes {stable_mosaic.version = 11 : i64} {
  func.func @_lstm_kernel(%arg0: memref<64x16xf32, #tpu.memory_space<vmem>>, %arg1: memref<16x128xf32, #tpu.memory_space<vmem>>, %arg2: memref<32x128xf32, #tpu.memory_space<vmem>>, %arg3: memref<1x128xf32, #tpu.memory_space<vmem>>, %arg4: memref<32x16xf32, #tpu.memory_space<vmem>>, %arg5: memref<1x16xf32, #tpu.memory_space<vmem>>, %arg6: memref<8x32xf32, #tpu.memory_space<vmem>>, %arg7: memref<8x32xf32, #tpu.memory_space<vmem>>, %arg8: memref<8x16xf32, #tpu.memory_space<vmem>>, %arg9: memref<8x32xf32, #tpu.memory_space<vmem>>, %arg10: memref<8x32xf32, #tpu.memory_space<vmem>>, %arg11: memref<64x128xf32, #tpu.memory_space<vmem>>) attributes {dimension_semantics = [], scalar_prefetch = 0 : i64, scratch_operands = 1 : i64, tpu.core_type = #tpu.core_type<tc>} {
    %c0 = arith.constant 0 : index
    %c0_0 = arith.constant 0 : index
    %0 = vector.load %arg2[%c0, %c0_0] : memref<32x128xf32, #tpu.memory_space<vmem>>, vector<32x128xf32>
    %c0_1 = arith.constant 0 : index
    %c0_2 = arith.constant 0 : index
    %1 = vector.load %arg0[%c0_1, %c0_2] : memref<64x16xf32, #tpu.memory_space<vmem>>, vector<64x16xf32>
    %c0_3 = arith.constant 0 : index
    %c0_4 = arith.constant 0 : index
    %2 = vector.load %arg1[%c0_3, %c0_4] : memref<16x128xf32, #tpu.memory_space<vmem>>, vector<16x128xf32>
    %cst = arith.constant dense<0.000000e+00> : vector<64x128xf32>
    %3 = tpu.matmul %1, %2, %cst {dimension_numbers = #tpu.dot_dimension_numbers<[1], [0], [0], [1], [0, 0, 1, 1], [], []>} : vector<64x16xf32>, vector<16x128xf32>, vector<64x128xf32> -> vector<64x128xf32>
    %c0_5 = arith.constant 0 : index
    %c0_6 = arith.constant 0 : index
    %4 = vector.load %arg3[%c0_5, %c0_6] : memref<1x128xf32, #tpu.memory_space<vmem>>, vector<1x128xf32>
    %5 = vector.broadcast %4 : vector<1x128xf32> to vector<64x128xf32>
    %6 = arith.addf %3, %5 : vector<64x128xf32>
    %c0_7 = arith.constant 0 : index
    %c0_8 = arith.constant 0 : index
    %7 = vector.load %arg11[%c0_7, %c0_8] : memref<64x128xf32, #tpu.memory_space<vmem>>, vector<64x128xf32>
    tpu.vector_store %arg11[%c0_7, %c0_8], %6 {strides = array<i32>} : memref<64x128xf32, #tpu.memory_space<vmem>>, vector<64x128xf32>,
    %c0_9 = arith.constant 0 : index
    %c0_10 = arith.constant 0 : index
    %8 = vector.load %arg6[%c0_9, %c0_10] : memref<8x32xf32, #tpu.memory_space<vmem>>, vector<8x32xf32>
    %c0_11 = arith.constant 0 : index
    %c0_12 = arith.constant 0 : index
    %9 = vector.load %arg7[%c0_11, %c0_12] : memref<8x32xf32, #tpu.memory_space<vmem>>, vector<8x32xf32>
    %c0_i32 = arith.constant 0 : i32
    %c8_i32 = arith.constant 8 : i32
    %10 = arith.muli %c0_i32, %c8_i32 : i32
    %11 = tpu.assume_multiple %10, 8 : i32
    %12 = arith.index_cast %11 : i32 to index
    %c0_13 = arith.constant 0 : index
    %13 = vector.load %arg11[%12, %c0_13] : memref<64x128xf32, #tpu.memory_space<vmem>>, vector<8x128xf32>
    %cst_14 = arith.constant dense<0.000000e+00> : vector<8x128xf32>
    %14 = tpu.matmul %8, %0, %cst_14 {dimension_numbers = #tpu.dot_dimension_numbers<[1], [0], [0], [1], [0, 0, 1, 1], [], []>} : vector<8x32xf32>, vector<32x128xf32>, vector<8x128xf32> -> vector<8x128xf32>
    %15 = arith.addf %13, %14 : vector<8x128xf32>
    %16 = vector.extract_strided_slice %15 {offsets = [0, 0], sizes = [8, 32], strides = [1, 1]} : vector<8x128xf32> to vector<8x32xf32>
    %17 = arith.negf %16 : vector<8x32xf32>
    %18 = math.exp %17 : vector<8x32xf32>
    %cst_15 = arith.constant 1.000000e+00 : f32
    %19 = vector.broadcast %cst_15 : f32 to vector<8x32xf32>
    %20 = arith.addf %19, %18 : vector<8x32xf32>
    %21 = arith.divf %19, %20 : vector<8x32xf32>
    %22 = vector.extract_strided_slice %15 {offsets = [0, 32], sizes = [8, 32], strides = [1, 1]} : vector<8x128xf32> to vector<8x32xf32>
    %23 = arith.negf %22 : vector<8x32xf32>
    %24 = math.exp %23 : vector<8x32xf32>
    %cst_16 = arith.constant 1.000000e+00 : f32
    %25 = vector.broadcast %cst_16 : f32 to vector<8x32xf32>
    %26 = arith.addf %25, %24 : vector<8x32xf32>
    %27 = arith.divf %25, %26 : vector<8x32xf32>
    %28 = vector.extract_strided_slice %15 {offsets = [0, 64], sizes = [8, 32], strides = [1, 1]} : vector<8x128xf32> to vector<8x32xf32>
    %29 = math.tanh %28 : vector<8x32xf32>
    %30 = vector.extract_strided_slice %15 {offsets = [0, 96], sizes = [8, 32], strides = [1, 1]} : vector<8x128xf32> to vector<8x32xf32>
    %31 = arith.negf %30 : vector<8x32xf32>
    %32 = math.exp %31 : vector<8x32xf32>
    %cst_17 = arith.constant 1.000000e+00 : f32
    %33 = vector.broadcast %cst_17 : f32 to vector<8x32xf32>
    %34 = arith.addf %33, %32 : vector<8x32xf32>
    %35 = arith.divf %33, %34 : vector<8x32xf32>
    %36 = arith.mulf %27, %9 : vector<8x32xf32>
    %37 = arith.mulf %21, %29 : vector<8x32xf32>
    %38 = arith.addf %36, %37 : vector<8x32xf32>
    %39 = math.tanh %38 : vector<8x32xf32>
    %40 = arith.mulf %35, %39 : vector<8x32xf32>
    %c1_i32 = arith.constant 1 : i32
    %c8_i32_18 = arith.constant 8 : i32
    %41 = arith.muli %c1_i32, %c8_i32_18 : i32
    %42 = tpu.assume_multiple %41, 8 : i32
    %43 = arith.index_cast %42 : i32 to index
    %c0_19 = arith.constant 0 : index
    %44 = vector.load %arg11[%43, %c0_19] : memref<64x128xf32, #tpu.memory_space<vmem>>, vector<8x128xf32>
    %cst_20 = arith.constant dense<0.000000e+00> : vector<8x128xf32>
    %45 = tpu.matmul %40, %0, %cst_20 {dimension_numbers = #tpu.dot_dimension_numbers<[1], [0], [0], [1], [0, 0, 1, 1], [], []>} : vector<8x32xf32>, vector<32x128xf32>, vector<8x128xf32> -> vector<8x128xf32>
    %46 = arith.addf %44, %45 : vector<8x128xf32>
    %47 = vector.extract_strided_slice %46 {offsets = [0, 0], sizes = [8, 32], strides = [1, 1]} : vector<8x128xf32> to vector<8x32xf32>
    %48 = arith.negf %47 : vector<8x32xf32>
    %49 = math.exp %48 : vector<8x32xf32>
    %cst_21 = arith.constant 1.000000e+00 : f32
    %50 = vector.broadcast %cst_21 : f32 to vector<8x32xf32>
    %51 = arith.addf %50, %49 : vector<8x32xf32>
    %52 = arith.divf %50, %51 : vector<8x32xf32>
    %53 = vector.extract_strided_slice %46 {offsets = [0, 32], sizes = [8, 32], strides = [1, 1]} : vector<8x128xf32> to vector<8x32xf32>
    %54 = arith.negf %53 : vector<8x32xf32>
    %55 = math.exp %54 : vector<8x32xf32>
    %cst_22 = arith.constant 1.000000e+00 : f32
    %56 = vector.broadcast %cst_22 : f32 to vector<8x32xf32>
    %57 = arith.addf %56, %55 : vector<8x32xf32>
    %58 = arith.divf %56, %57 : vector<8x32xf32>
    %59 = vector.extract_strided_slice %46 {offsets = [0, 64], sizes = [8, 32], strides = [1, 1]} : vector<8x128xf32> to vector<8x32xf32>
    %60 = math.tanh %59 : vector<8x32xf32>
    %61 = vector.extract_strided_slice %46 {offsets = [0, 96], sizes = [8, 32], strides = [1, 1]} : vector<8x128xf32> to vector<8x32xf32>
    %62 = arith.negf %61 : vector<8x32xf32>
    %63 = math.exp %62 : vector<8x32xf32>
    %cst_23 = arith.constant 1.000000e+00 : f32
    %64 = vector.broadcast %cst_23 : f32 to vector<8x32xf32>
    %65 = arith.addf %64, %63 : vector<8x32xf32>
    %66 = arith.divf %64, %65 : vector<8x32xf32>
    %67 = arith.mulf %58, %38 : vector<8x32xf32>
    %68 = arith.mulf %52, %60 : vector<8x32xf32>
    %69 = arith.addf %67, %68 : vector<8x32xf32>
    %70 = math.tanh %69 : vector<8x32xf32>
    %71 = arith.mulf %66, %70 : vector<8x32xf32>
    %c2_i32 = arith.constant 2 : i32
    %c8_i32_24 = arith.constant 8 : i32
    %72 = arith.muli %c2_i32, %c8_i32_24 : i32
    %73 = tpu.assume_multiple %72, 8 : i32
    %74 = arith.index_cast %73 : i32 to index
    %c0_25 = arith.constant 0 : index
    %75 = vector.load %arg11[%74, %c0_25] : memref<64x128xf32, #tpu.memory_space<vmem>>, vector<8x128xf32>
    %cst_26 = arith.constant dense<0.000000e+00> : vector<8x128xf32>
    %76 = tpu.matmul %71, %0, %cst_26 {dimension_numbers = #tpu.dot_dimension_numbers<[1], [0], [0], [1], [0, 0, 1, 1], [], []>} : vector<8x32xf32>, vector<32x128xf32>, vector<8x128xf32> -> vector<8x128xf32>
    %77 = arith.addf %75, %76 : vector<8x128xf32>
    %78 = vector.extract_strided_slice %77 {offsets = [0, 0], sizes = [8, 32], strides = [1, 1]} : vector<8x128xf32> to vector<8x32xf32>
    %79 = arith.negf %78 : vector<8x32xf32>
    %80 = math.exp %79 : vector<8x32xf32>
    %cst_27 = arith.constant 1.000000e+00 : f32
    %81 = vector.broadcast %cst_27 : f32 to vector<8x32xf32>
    %82 = arith.addf %81, %80 : vector<8x32xf32>
    %83 = arith.divf %81, %82 : vector<8x32xf32>
    %84 = vector.extract_strided_slice %77 {offsets = [0, 32], sizes = [8, 32], strides = [1, 1]} : vector<8x128xf32> to vector<8x32xf32>
    %85 = arith.negf %84 : vector<8x32xf32>
    %86 = math.exp %85 : vector<8x32xf32>
    %cst_28 = arith.constant 1.000000e+00 : f32
    %87 = vector.broadcast %cst_28 : f32 to vector<8x32xf32>
    %88 = arith.addf %87, %86 : vector<8x32xf32>
    %89 = arith.divf %87, %88 : vector<8x32xf32>
    %90 = vector.extract_strided_slice %77 {offsets = [0, 64], sizes = [8, 32], strides = [1, 1]} : vector<8x128xf32> to vector<8x32xf32>
    %91 = math.tanh %90 : vector<8x32xf32>
    %92 = vector.extract_strided_slice %77 {offsets = [0, 96], sizes = [8, 32], strides = [1, 1]} : vector<8x128xf32> to vector<8x32xf32>
    %93 = arith.negf %92 : vector<8x32xf32>
    %94 = math.exp %93 : vector<8x32xf32>
    %cst_29 = arith.constant 1.000000e+00 : f32
    %95 = vector.broadcast %cst_29 : f32 to vector<8x32xf32>
    %96 = arith.addf %95, %94 : vector<8x32xf32>
    %97 = arith.divf %95, %96 : vector<8x32xf32>
    %98 = arith.mulf %89, %69 : vector<8x32xf32>
    %99 = arith.mulf %83, %91 : vector<8x32xf32>
    %100 = arith.addf %98, %99 : vector<8x32xf32>
    %101 = math.tanh %100 : vector<8x32xf32>
    %102 = arith.mulf %97, %101 : vector<8x32xf32>
    %c3_i32 = arith.constant 3 : i32
    %c8_i32_30 = arith.constant 8 : i32
    %103 = arith.muli %c3_i32, %c8_i32_30 : i32
    %104 = tpu.assume_multiple %103, 8 : i32
    %105 = arith.index_cast %104 : i32 to index
    %c0_31 = arith.constant 0 : index
    %106 = vector.load %arg11[%105, %c0_31] : memref<64x128xf32, #tpu.memory_space<vmem>>, vector<8x128xf32>
    %cst_32 = arith.constant dense<0.000000e+00> : vector<8x128xf32>
    %107 = tpu.matmul %102, %0, %cst_32 {dimension_numbers = #tpu.dot_dimension_numbers<[1], [0], [0], [1], [0, 0, 1, 1], [], []>} : vector<8x32xf32>, vector<32x128xf32>, vector<8x128xf32> -> vector<8x128xf32>
    %108 = arith.addf %106, %107 : vector<8x128xf32>
    %109 = vector.extract_strided_slice %108 {offsets = [0, 0], sizes = [8, 32], strides = [1, 1]} : vector<8x128xf32> to vector<8x32xf32>
    %110 = arith.negf %109 : vector<8x32xf32>
    %111 = math.exp %110 : vector<8x32xf32>
    %cst_33 = arith.constant 1.000000e+00 : f32
    %112 = vector.broadcast %cst_33 : f32 to vector<8x32xf32>
    %113 = arith.addf %112, %111 : vector<8x32xf32>
    %114 = arith.divf %112, %113 : vector<8x32xf32>
    %115 = vector.extract_strided_slice %108 {offsets = [0, 32], sizes = [8, 32], strides = [1, 1]} : vector<8x128xf32> to vector<8x32xf32>
    %116 = arith.negf %115 : vector<8x32xf32>
    %117 = math.exp %116 : vector<8x32xf32>
    %cst_34 = arith.constant 1.000000e+00 : f32
    %118 = vector.broadcast %cst_34 : f32 to vector<8x32xf32>
    %119 = arith.addf %118, %117 : vector<8x32xf32>
    %120 = arith.divf %118, %119 : vector<8x32xf32>
    %121 = vector.extract_strided_slice %108 {offsets = [0, 64], sizes = [8, 32], strides = [1, 1]} : vector<8x128xf32> to vector<8x32xf32>
    %122 = math.tanh %121 : vector<8x32xf32>
    %123 = vector.extract_strided_slice %108 {offsets = [0, 96], sizes = [8, 32], strides = [1, 1]} : vector<8x128xf32> to vector<8x32xf32>
    %124 = arith.negf %123 : vector<8x32xf32>
    %125 = math.exp %124 : vector<8x32xf32>
    %cst_35 = arith.constant 1.000000e+00 : f32
    %126 = vector.broadcast %cst_35 : f32 to vector<8x32xf32>
    %127 = arith.addf %126, %125 : vector<8x32xf32>
    %128 = arith.divf %126, %127 : vector<8x32xf32>
    %129 = arith.mulf %120, %100 : vector<8x32xf32>
    %130 = arith.mulf %114, %122 : vector<8x32xf32>
    %131 = arith.addf %129, %130 : vector<8x32xf32>
    %132 = math.tanh %131 : vector<8x32xf32>
    %133 = arith.mulf %128, %132 : vector<8x32xf32>
    %c4_i32 = arith.constant 4 : i32
    %c8_i32_36 = arith.constant 8 : i32
    %134 = arith.muli %c4_i32, %c8_i32_36 : i32
    %135 = tpu.assume_multiple %134, 8 : i32
    %136 = arith.index_cast %135 : i32 to index
    %c0_37 = arith.constant 0 : index
    %137 = vector.load %arg11[%136, %c0_37] : memref<64x128xf32, #tpu.memory_space<vmem>>, vector<8x128xf32>
    %cst_38 = arith.constant dense<0.000000e+00> : vector<8x128xf32>
    %138 = tpu.matmul %133, %0, %cst_38 {dimension_numbers = #tpu.dot_dimension_numbers<[1], [0], [0], [1], [0, 0, 1, 1], [], []>} : vector<8x32xf32>, vector<32x128xf32>, vector<8x128xf32> -> vector<8x128xf32>
    %139 = arith.addf %137, %138 : vector<8x128xf32>
    %140 = vector.extract_strided_slice %139 {offsets = [0, 0], sizes = [8, 32], strides = [1, 1]} : vector<8x128xf32> to vector<8x32xf32>
    %141 = arith.negf %140 : vector<8x32xf32>
    %142 = math.exp %141 : vector<8x32xf32>
    %cst_39 = arith.constant 1.000000e+00 : f32
    %143 = vector.broadcast %cst_39 : f32 to vector<8x32xf32>
    %144 = arith.addf %143, %142 : vector<8x32xf32>
    %145 = arith.divf %143, %144 : vector<8x32xf32>
    %146 = vector.extract_strided_slice %139 {offsets = [0, 32], sizes = [8, 32], strides = [1, 1]} : vector<8x128xf32> to vector<8x32xf32>
    %147 = arith.negf %146 : vector<8x32xf32>
    %148 = math.exp %147 : vector<8x32xf32>
    %cst_40 = arith.constant 1.000000e+00 : f32
    %149 = vector.broadcast %cst_40 : f32 to vector<8x32xf32>
    %150 = arith.addf %149, %148 : vector<8x32xf32>
    %151 = arith.divf %149, %150 : vector<8x32xf32>
    %152 = vector.extract_strided_slice %139 {offsets = [0, 64], sizes = [8, 32], strides = [1, 1]} : vector<8x128xf32> to vector<8x32xf32>
    %153 = math.tanh %152 : vector<8x32xf32>
    %154 = vector.extract_strided_slice %139 {offsets = [0, 96], sizes = [8, 32], strides = [1, 1]} : vector<8x128xf32> to vector<8x32xf32>
    %155 = arith.negf %154 : vector<8x32xf32>
    %156 = math.exp %155 : vector<8x32xf32>
    %cst_41 = arith.constant 1.000000e+00 : f32
    %157 = vector.broadcast %cst_41 : f32 to vector<8x32xf32>
    %158 = arith.addf %157, %156 : vector<8x32xf32>
    %159 = arith.divf %157, %158 : vector<8x32xf32>
    %160 = arith.mulf %151, %131 : vector<8x32xf32>
    %161 = arith.mulf %145, %153 : vector<8x32xf32>
    %162 = arith.addf %160, %161 : vector<8x32xf32>
    %163 = math.tanh %162 : vector<8x32xf32>
    %164 = arith.mulf %159, %163 : vector<8x32xf32>
    %c5_i32 = arith.constant 5 : i32
    %c8_i32_42 = arith.constant 8 : i32
    %165 = arith.muli %c5_i32, %c8_i32_42 : i32
    %166 = tpu.assume_multiple %165, 8 : i32
    %167 = arith.index_cast %166 : i32 to index
    %c0_43 = arith.constant 0 : index
    %168 = vector.load %arg11[%167, %c0_43] : memref<64x128xf32, #tpu.memory_space<vmem>>, vector<8x128xf32>
    %cst_44 = arith.constant dense<0.000000e+00> : vector<8x128xf32>
    %169 = tpu.matmul %164, %0, %cst_44 {dimension_numbers = #tpu.dot_dimension_numbers<[1], [0], [0], [1], [0, 0, 1, 1], [], []>} : vector<8x32xf32>, vector<32x128xf32>, vector<8x128xf32> -> vector<8x128xf32>
    %170 = arith.addf %168, %169 : vector<8x128xf32>
    %171 = vector.extract_strided_slice %170 {offsets = [0, 0], sizes = [8, 32], strides = [1, 1]} : vector<8x128xf32> to vector<8x32xf32>
    %172 = arith.negf %171 : vector<8x32xf32>
    %173 = math.exp %172 : vector<8x32xf32>
    %cst_45 = arith.constant 1.000000e+00 : f32
    %174 = vector.broadcast %cst_45 : f32 to vector<8x32xf32>
    %175 = arith.addf %174, %173 : vector<8x32xf32>
    %176 = arith.divf %174, %175 : vector<8x32xf32>
    %177 = vector.extract_strided_slice %170 {offsets = [0, 32], sizes = [8, 32], strides = [1, 1]} : vector<8x128xf32> to vector<8x32xf32>
    %178 = arith.negf %177 : vector<8x32xf32>
    %179 = math.exp %178 : vector<8x32xf32>
    %cst_46 = arith.constant 1.000000e+00 : f32
    %180 = vector.broadcast %cst_46 : f32 to vector<8x32xf32>
    %181 = arith.addf %180, %179 : vector<8x32xf32>
    %182 = arith.divf %180, %181 : vector<8x32xf32>
    %183 = vector.extract_strided_slice %170 {offsets = [0, 64], sizes = [8, 32], strides = [1, 1]} : vector<8x128xf32> to vector<8x32xf32>
    %184 = math.tanh %183 : vector<8x32xf32>
    %185 = vector.extract_strided_slice %170 {offsets = [0, 96], sizes = [8, 32], strides = [1, 1]} : vector<8x128xf32> to vector<8x32xf32>
    %186 = arith.negf %185 : vector<8x32xf32>
    %187 = math.exp %186 : vector<8x32xf32>
    %cst_47 = arith.constant 1.000000e+00 : f32
    %188 = vector.broadcast %cst_47 : f32 to vector<8x32xf32>
    %189 = arith.addf %188, %187 : vector<8x32xf32>
    %190 = arith.divf %188, %189 : vector<8x32xf32>
    %191 = arith.mulf %182, %162 : vector<8x32xf32>
    %192 = arith.mulf %176, %184 : vector<8x32xf32>
    %193 = arith.addf %191, %192 : vector<8x32xf32>
    %194 = math.tanh %193 : vector<8x32xf32>
    %195 = arith.mulf %190, %194 : vector<8x32xf32>
    %c6_i32 = arith.constant 6 : i32
    %c8_i32_48 = arith.constant 8 : i32
    %196 = arith.muli %c6_i32, %c8_i32_48 : i32
    %197 = tpu.assume_multiple %196, 8 : i32
    %198 = arith.index_cast %197 : i32 to index
    %c0_49 = arith.constant 0 : index
    %199 = vector.load %arg11[%198, %c0_49] : memref<64x128xf32, #tpu.memory_space<vmem>>, vector<8x128xf32>
    %cst_50 = arith.constant dense<0.000000e+00> : vector<8x128xf32>
    %200 = tpu.matmul %195, %0, %cst_50 {dimension_numbers = #tpu.dot_dimension_numbers<[1], [0], [0], [1], [0, 0, 1, 1], [], []>} : vector<8x32xf32>, vector<32x128xf32>, vector<8x128xf32> -> vector<8x128xf32>
    %201 = arith.addf %199, %200 : vector<8x128xf32>
    %202 = vector.extract_strided_slice %201 {offsets = [0, 0], sizes = [8, 32], strides = [1, 1]} : vector<8x128xf32> to vector<8x32xf32>
    %203 = arith.negf %202 : vector<8x32xf32>
    %204 = math.exp %203 : vector<8x32xf32>
    %cst_51 = arith.constant 1.000000e+00 : f32
    %205 = vector.broadcast %cst_51 : f32 to vector<8x32xf32>
    %206 = arith.addf %205, %204 : vector<8x32xf32>
    %207 = arith.divf %205, %206 : vector<8x32xf32>
    %208 = vector.extract_strided_slice %201 {offsets = [0, 32], sizes = [8, 32], strides = [1, 1]} : vector<8x128xf32> to vector<8x32xf32>
    %209 = arith.negf %208 : vector<8x32xf32>
    %210 = math.exp %209 : vector<8x32xf32>
    %cst_52 = arith.constant 1.000000e+00 : f32
    %211 = vector.broadcast %cst_52 : f32 to vector<8x32xf32>
    %212 = arith.addf %211, %210 : vector<8x32xf32>
    %213 = arith.divf %211, %212 : vector<8x32xf32>
    %214 = vector.extract_strided_slice %201 {offsets = [0, 64], sizes = [8, 32], strides = [1, 1]} : vector<8x128xf32> to vector<8x32xf32>
    %215 = math.tanh %214 : vector<8x32xf32>
    %216 = vector.extract_strided_slice %201 {offsets = [0, 96], sizes = [8, 32], strides = [1, 1]} : vector<8x128xf32> to vector<8x32xf32>
    %217 = arith.negf %216 : vector<8x32xf32>
    %218 = math.exp %217 : vector<8x32xf32>
    %cst_53 = arith.constant 1.000000e+00 : f32
    %219 = vector.broadcast %cst_53 : f32 to vector<8x32xf32>
    %220 = arith.addf %219, %218 : vector<8x32xf32>
    %221 = arith.divf %219, %220 : vector<8x32xf32>
    %222 = arith.mulf %213, %193 : vector<8x32xf32>
    %223 = arith.mulf %207, %215 : vector<8x32xf32>
    %224 = arith.addf %222, %223 : vector<8x32xf32>
    %225 = math.tanh %224 : vector<8x32xf32>
    %226 = arith.mulf %221, %225 : vector<8x32xf32>
    %c7_i32 = arith.constant 7 : i32
    %c8_i32_54 = arith.constant 8 : i32
    %227 = arith.muli %c7_i32, %c8_i32_54 : i32
    %228 = tpu.assume_multiple %227, 8 : i32
    %229 = arith.index_cast %228 : i32 to index
    %c0_55 = arith.constant 0 : index
    %230 = vector.load %arg11[%229, %c0_55] : memref<64x128xf32, #tpu.memory_space<vmem>>, vector<8x128xf32>
    %cst_56 = arith.constant dense<0.000000e+00> : vector<8x128xf32>
    %231 = tpu.matmul %226, %0, %cst_56 {dimension_numbers = #tpu.dot_dimension_numbers<[1], [0], [0], [1], [0, 0, 1, 1], [], []>} : vector<8x32xf32>, vector<32x128xf32>, vector<8x128xf32> -> vector<8x128xf32>
    %232 = arith.addf %230, %231 : vector<8x128xf32>
    %233 = vector.extract_strided_slice %232 {offsets = [0, 0], sizes = [8, 32], strides = [1, 1]} : vector<8x128xf32> to vector<8x32xf32>
    %234 = arith.negf %233 : vector<8x32xf32>
    %235 = math.exp %234 : vector<8x32xf32>
    %cst_57 = arith.constant 1.000000e+00 : f32
    %236 = vector.broadcast %cst_57 : f32 to vector<8x32xf32>
    %237 = arith.addf %236, %235 : vector<8x32xf32>
    %238 = arith.divf %236, %237 : vector<8x32xf32>
    %239 = vector.extract_strided_slice %232 {offsets = [0, 32], sizes = [8, 32], strides = [1, 1]} : vector<8x128xf32> to vector<8x32xf32>
    %240 = arith.negf %239 : vector<8x32xf32>
    %241 = math.exp %240 : vector<8x32xf32>
    %cst_58 = arith.constant 1.000000e+00 : f32
    %242 = vector.broadcast %cst_58 : f32 to vector<8x32xf32>
    %243 = arith.addf %242, %241 : vector<8x32xf32>
    %244 = arith.divf %242, %243 : vector<8x32xf32>
    %245 = vector.extract_strided_slice %232 {offsets = [0, 64], sizes = [8, 32], strides = [1, 1]} : vector<8x128xf32> to vector<8x32xf32>
    %246 = math.tanh %245 : vector<8x32xf32>
    %247 = vector.extract_strided_slice %232 {offsets = [0, 96], sizes = [8, 32], strides = [1, 1]} : vector<8x128xf32> to vector<8x32xf32>
    %248 = arith.negf %247 : vector<8x32xf32>
    %249 = math.exp %248 : vector<8x32xf32>
    %cst_59 = arith.constant 1.000000e+00 : f32
    %250 = vector.broadcast %cst_59 : f32 to vector<8x32xf32>
    %251 = arith.addf %250, %249 : vector<8x32xf32>
    %252 = arith.divf %250, %251 : vector<8x32xf32>
    %253 = arith.mulf %244, %224 : vector<8x32xf32>
    %254 = arith.mulf %238, %246 : vector<8x32xf32>
    %255 = arith.addf %253, %254 : vector<8x32xf32>
    %256 = math.tanh %255 : vector<8x32xf32>
    %257 = arith.mulf %252, %256 : vector<8x32xf32>
    %c8_i32_60 = arith.constant 8 : i32
    %c0_61 = arith.constant 0 : index
    %c0_62 = arith.constant 0 : index
    %258 = vector.load %arg9[%c0_61, %c0_62] : memref<8x32xf32, #tpu.memory_space<vmem>>, vector<8x32xf32>
    tpu.vector_store %arg9[%c0_61, %c0_62], %257 {strides = array<i32>} : memref<8x32xf32, #tpu.memory_space<vmem>>, vector<8x32xf32>,
    %c0_63 = arith.constant 0 : index
    %c0_64 = arith.constant 0 : index
    %259 = vector.load %arg10[%c0_63, %c0_64] : memref<8x32xf32, #tpu.memory_space<vmem>>, vector<8x32xf32>
    tpu.vector_store %arg10[%c0_63, %c0_64], %255 {strides = array<i32>} : memref<8x32xf32, #tpu.memory_space<vmem>>, vector<8x32xf32>,
    %c0_65 = arith.constant 0 : index
    %c0_66 = arith.constant 0 : index
    %260 = vector.load %arg4[%c0_65, %c0_66] : memref<32x16xf32, #tpu.memory_space<vmem>>, vector<32x16xf32>
    %cst_67 = arith.constant dense<0.000000e+00> : vector<8x16xf32>
    %261 = tpu.matmul %257, %260, %cst_67 {dimension_numbers = #tpu.dot_dimension_numbers<[1], [0], [0], [1], [0, 0, 1, 1], [], []>} : vector<8x32xf32>, vector<32x16xf32>, vector<8x16xf32> -> vector<8x16xf32>
    %c0_68 = arith.constant 0 : index
    %c0_69 = arith.constant 0 : index
    %262 = vector.load %arg5[%c0_68, %c0_69] : memref<1x16xf32, #tpu.memory_space<vmem>>, vector<1x16xf32>
    %263 = vector.broadcast %262 : vector<1x16xf32> to vector<8x16xf32>
    %264 = arith.addf %261, %263 : vector<8x16xf32>
    %c0_70 = arith.constant 0 : index
    %c0_71 = arith.constant 0 : index
    %265 = vector.load %arg8[%c0_70, %c0_71] : memref<8x16xf32, #tpu.memory_space<vmem>>, vector<8x16xf32>
    tpu.vector_store %arg8[%c0_70, %c0_71], %264 {strides = array<i32>} : memref<8x16xf32, #tpu.memory_space<vmem>>, vector<8x16xf32>,
    return
  }
}

</mosaic_0001>

<bundles_post_ra>
// kernel: lstm_model_forward.1
= control target key start
LH: loop header
LB: loop body
LE: loop exit
PB: predicated region body
PF: predicated region fallthrough
CT: control target
= control target key end

     0   :  { %16 = vsyncpa [#allocation4], 0  ;;  %vm52_vm0 = vcmask 130048   ;;  %s1163_s0 = inlined_call_operand.vmem [shape: f32[64,16], index: 0, kind: input, shape index: {}]   ;;  %s1164_s1 = inlined_call_operand.vmem [shape: f32[16,128], index: 1, kind: input, shape index: {}]   ;;  %s1165_s2 = inlined_call_operand.vmem [shape: f32[32,128], index: 2, kind: input, shape index: {}]   ;;  %s1166_s3 = inlined_call_operand.vmem [shape: f32[1,128], index: 3, kind: input, shape index: {}]   ;;  %s1167_s4 = inlined_call_operand.vmem [shape: f32[32,16], index: 4, kind: input, shape index: {}]   ;;  %s1168_s5 = inlined_call_operand.vmem [shape: f32[1,16], index: 5, kind: input, shape index: {}]   ;;  %s1169_s6 = inlined_call_operand.vmem [shape: f32[8,32], index: 6, kind: input, shape index: {}]   ;;  %s1170_s7 = inlined_call_operand.vmem [shape: f32[8,32], index: 7, kind: input, shape index: {}]   ;;  %s1171_s8 = inlined_call_operand.hbm [shape: f32[8,16], index: 8, kind: output, shape index: {0}]   ;;  %s1172_s9 = inlined_call_operand.hbm [shape: f32[8,32], index: 9, kind: output, shape index: {1}]   ;;  %s1173_s10 = inlined_call_operand.hbm [shape: f32[8,32], index: 10, kind: output, shape index: {2}]  }
   0x1   :  { %v47_v0 = vld [vmem:[%s1164_s1 + $0x8] sm:$0xff]  ;;  %v46_v1 = vld [vmem:[%s1164_s1] sm:$0xff]  ;;  %v988_v3 = vld [vmem:[%s1165_s2 + $0x18] sm:$0xff] }
   0x2   :  { %763 = vmatpush.msra.mxu1 %v47_v0  ;;  %v43_v2 = vld [vmem:[%s1163_s0 + $0x28] sm:$0xff]  ;;  %91 = vmatpush.msra.mxu0 %v47_v0  ;;  %v38_v4 = vld [vmem:[%s1163_s0] sm:$0xff]  ;;  %v998_v5 = vld [vmem:[%s1165_s2 + $0x10] sm:$0xff] }
   0x3   :  { %764 = vmatpush.msra.mxu2 %v47_v0  ;;  %279 = vmatpush.msra.mxu3 %v988_v3 }
   0x4   :  { %765 = vmatpush.msra.mxu1 %v46_v1  ;;  %92 = vmatpush.msra.mxu0 %v46_v1 }
   0x5   :  { %743 = vmatmul.msk.f32.vlgmr.msra.gmra.mxu1 %vm52_vm0, %v43_v2  ;;  %738 = vmatmul.msk.f32.vlgmr.msra.gmra.mxu0 %vm52_vm0, %v38_v4 }
   0x6   :  { %17 = vsyncpa [#allocation6], 0  ;;  %145 = vmatpush.msrb.mxu1 %v988_v3  ;;  %766 = vmatpush.msra.mxu2 %v46_v1  ;;  %v1005_v6 = vld [vmem:[%s1165_s2 + $0x8] sm:$0xff]  ;;  %v1013_v7 = vld [vmem:[%s1165_s2] sm:$0xff]  ;;  %vm129_vm1 = vcmask 261120   ;;  %s915_s30 = smov 64  }
   0x7   :  { %280 = vmatpush.msra.mxu3 %v998_v5  ;;  %v126_v8 = vld [vmem:[%s1169_s6] sm:$0xff]  ;;  %s916_s13 = smov 32   ;;  %v44_v37 = vld [vmem:[%s1163_s0 + $0x30] sm:$0xff]  ;;  %v45_v38 = vld [vmem:[%s1163_s0 + $0x38] sm:$0xff]  ;;  %s918_s6 = smov [#allocation5]  }
   0x8   :  { %214 = vmatpush.msrb.mxu2 %v988_v3  ;;  %146 = vmatpush.msrb.mxu1 %v998_v5  ;;  %v1043_v11 = vld [vmem:[%s1166_s3] ss:$0 sm:$0xff]  ;;  %v39_v41 = vld [vmem:[%s1163_s0 + $0x8] sm:$0xff]  ;;  %s919_s3 = smov [#allocation7]   ;;  %s920_s18 = smov [#allocation3]  }
   0x9   :  { %281 = vmatpush.msra.mxu3 %v1005_v6  ;;  %v127_v16 = vld [vmem:[%s1170_s7] sm:$0xff]  ;;  %744 = vmatmul.msk.f32.vlgmr.msra.gmra.mxu2 %vm52_vm0, %v44_v37  ;;  %s718_s7 = sshll.u32 %s919_s3, 4  ;;  %s696_s19 = sshll.u32 %s920_s18, 4  ;;  %s719_s7 = int_to_ptr.vmem [resolvable:$true] %s718_s7  ;;  %s697_s19 = int_to_ptr.vmem [resolvable:$true] %s696_s19 }
   0xa   :  { %215 = vmatpush.msrb.mxu2 %v998_v5  ;;  %147 = vmatpush.msrb.mxu1 %v1005_v6  ;;  %s698_s21 = sshll.u32 %s1171_s8, 4  ;;  %s699_s21 = int_to_ptr.hbm [resolvable:$true] %s698_s21 }
   0xb   :  { %282 = vmatpush.msra.mxu3 %v1013_v7 }
   0xc   :  { %216 = vmatpush.msrb.mxu2 %v1005_v6  ;;  %148 = vmatpush.msrb.mxu1 %v1013_v7 }
   0xd   :  { %474 = vmatpush.msrb.mxu3 %v988_v3  ;;  %746 = vmatmul.msk.f32.vlgmr.msrb.gmra.mxu1 %vm129_vm1, %v126_v8 }
   0xe   :  { %217 = vmatpush.msrb.mxu2 %v1013_v7  ;;  %344 = vmatpush.msra.mxu1 %v988_v3 }
   0xf   :  { %475 = vmatpush.msrb.mxu3 %v998_v5  ;;  %739 = vmatmul.msk.f32.gmra.mxu0 %vm52_vm0, %v39_v41 }
  0x10   :  { %345 = vmatpush.msra.mxu1 %v998_v5  ;;  %409 = vmatpush.msra.mxu2 %v988_v3 }
  0x11   :  { %476 = vmatpush.msrb.mxu3 %v1005_v6  ;;  %745 = vmatmul.msk.f32.gmra.mxu2 %vm52_vm0, %v45_v38 }
  0x12   :  { %346 = vmatpush.msra.mxu1 %v1005_v6  ;;  %410 = vmatpush.msra.mxu2 %v998_v5 }
  0x13   :  { %477 = vmatpush.msrb.mxu3 %v1013_v7 }
  0x14   :  { %347 = vmatpush.msra.mxu1 %v1013_v7  ;;  %411 = vmatpush.msra.mxu2 %v1005_v6 }
  0x16   :  { %539 = vmatpush.msrb.mxu1 %v988_v3  ;;  %412 = vmatpush.msra.mxu2 %v1013_v7 }
  0x18   :  { %540 = vmatpush.msrb.mxu1 %v998_v5 }
  0x1a   :  { %541 = vmatpush.msrb.mxu1 %v1005_v6 }
  0x1c   :  { %542 = vmatpush.msrb.mxu1 %v1013_v7 }
  0x82   :  { %v1038_v9 = vpop.f32.mrf.mxu1  ;;  %v94_v10 = vpop.f32.mrf.mxu0 }
  0x83   :  { %v95_v12 = vadd.f32 %v1043_v11, %v94_v10 }
  0x8a   :  { %v150_v13 = vpop.f32.mrf.mxu1 }
  0x8b   :  { %v153_v14 = vadd.f32 %v150_v13, %v95_v12 }
  0x8c   :  { %v1075_v43 = vpop.f32.mrf.mxu2  ;;  %v97_v45 = vpop.f32.mrf.mxu0 }
  0x8d   :  { %775 = vtanh.f32 %v153_v14  ;;  %v747_v17 = vmul.f32 -1.442695, %v153_v14  ;;  %v98_v46 = vadd.f32 %v1043_v11, %v97_v45 }
  0x8f   :  { %777 = vpow2.f32 %v747_v17 }
  0x93   :  { %v776_v15 = vpop.eup %775 }
  0x94   :  { %180 = vrot.lane.b32.xlu0 %v776_v15, %s915_s30  ;;  %v1077_v44 = vpop.f32.mrf.mxu2 }
  0x95   :  { %v778_v18 = vpop.eup %777 }
  0x96   :  { %v157_v19 = vadd.f32 1.0, %v778_v18 }
  0x98   :  { %779 = vrcp.f32 %v157_v19  ;;  %v169_v25 = vand.u32 2147483648, %v157_v19  ;;  %vm163_vm3 = vweird.f32 %v157_v19  ;;  %v167_v26 = vand.u32 2147483647, %v157_v19 }
  0x9a   :  { %v170_v28 = vor.u32 1.1754944e-38, %v169_v25  ;;  %vm168_vm5 = vcmp.eq.f32.partialorder %v167_v26, 8.507059e+37 }
  0x9c   :  { %175 = vrot.lane.b32.xlu0 %v127_v16, %s916_s13 }
  0x9e   :  { %v780_v20 = vpop.eup %779 }
  0x9f   :  { %v159_v21 = vmul.f32 %v780_v20, %v157_v19  ;;  %vm164_vm2 = vweird.f32 %v780_v20 }
  0xa0   :  { %vm165_vm4 = vmor %vm163_vm3, %vm164_vm2 }
  0xa1   :  { %v160_v22 = vsub.f32 1.0, %v159_v21 }
  0xa3   :  { %v161_v23 = vmul.f32 %v780_v20, %v160_v22 }
  0xa5   :  { %v162_v24 = vadd.f32 %v780_v20, %v161_v23 }
  0xa7   :  { %v166_v27 = vsel %vm165_vm4, %v780_v20, %v162_v24 }
  0xa8   :  { %v171_v30 = vsel %vm168_vm5, %v170_v28, %v166_v27 }
 0x106   :  { %v181_v29 = vpop.permute.xlu0 %180 }
 0x107   :  { %v183_v31 = vmul.f32 %v181_v29, %v171_v30 }
 0x109   :  { %185 = vrot.lane.b32.xlu1 %v183_v31, %s916_s13 }
 0x10e   :  { %v176_v32 = vpop.permute.xlu0 %175 }
 0x10f   :  { %v178_v33 = vmul.f32 %v176_v32, %v171_v30 }
 0x17b   :  { %v186_v34 = vpop.permute.xlu1 %185 }
 0x17c   :  { %v188_v35 = vadd.f32 %v186_v34, %v178_v33 }
 0x17e   :  { %781 = vtanh.f32 %v188_v35 }
 0x184   :  { %v782_v36 = vpop.eup %781 }
 0x185   :  { %191 = vrot.lane.b32.xlu1 %v782_v36, %s915_s30 }
 0x1f7   :  { %v192_v39 = vpop.permute.xlu1 %191 }
 0x1f8   :  { %v194_v40 = vmul.f32 %v192_v39, %v171_v30 }
 0x1fa   :  { %198 = vrot.lane.b32.xlu2 %v194_v40, %s916_s13 }
 0x254   :  { %v199_v42 = vpop.permute.xlu2 %198 }
 0x255   :  { %748 = vmatmul.msk.f32.vlgmr.msrb.gmra.mxu2 %vm129_vm1, %v199_v42 }
 0x256   :  { %604 = vmatpush.msrb.mxu2 %v988_v3 }
 0x258   :  { %605 = vmatpush.msrb.mxu2 %v998_v5 }
 0x25a   :  { %606 = vmatpush.msrb.mxu2 %v1005_v6 }
 0x25c   :  { %607 = vmatpush.msrb.mxu2 %v1013_v7  ;;  %v40_v7 = vld [vmem:[%s1163_s0 + $0x10] sm:$0xff] }
 0x25d   :  { %740 = vmatmul.msk.f32.gmra.mxu0 %vm52_vm0, %v40_v7 }
 0x2d8   :  { %v219_v47 = vpop.f32.mrf.mxu2 }
 0x2d9   :  { %v222_v48 = vadd.f32 %v219_v47, %v98_v46 }
 0x2da   :  { %v100_v10 = vpop.f32.mrf.mxu0 }
 0x2db   :  { %783 = vtanh.f32 %v222_v48  ;;  %v749_v50 = vmul.f32 -1.442695, %v222_v48  ;;  %v101_v12 = vadd.f32 %v1043_v11, %v100_v10 }
 0x2dd   :  { %785 = vpow2.f32 %v749_v50 }
 0x2e1   :  { %v784_v49 = vpop.eup %783 }
 0x2e2   :  { %245 = vrot.lane.b32.xlu2 %v784_v49, %s915_s30 }
 0x2e3   :  { %v786_v51 = vpop.eup %785 }
 0x2e4   :  { %v226_v52 = vadd.f32 1.0, %v786_v51 }
 0x2e6   :  { %787 = vrcp.f32 %v226_v52  ;;  %v238_v58 = vand.u32 2147483648, %v226_v52  ;;  %vm232_vm7 = vweird.f32 %v226_v52  ;;  %v236_v59 = vand.u32 2147483647, %v226_v52 }
 0x2e8   :  { %v239_v61 = vor.u32 1.1754944e-38, %v238_v58  ;;  %vm237_vm9 = vcmp.eq.f32.partialorder %v236_v59, 8.507059e+37 }
 0x2ec   :  { %v788_v53 = vpop.eup %787 }
 0x2ed   :  { %v228_v54 = vmul.f32 %v788_v53, %v226_v52  ;;  %vm233_vm6 = vweird.f32 %v788_v53 }
 0x2ee   :  { %vm234_vm8 = vmor %vm232_vm7, %vm233_vm6 }
 0x2ef   :  { %v229_v55 = vsub.f32 1.0, %v228_v54 }
 0x2f1   :  { %v230_v56 = vmul.f32 %v788_v53, %v229_v55 }
 0x2f3   :  { %v231_v57 = vadd.f32 %v788_v53, %v230_v56 }
 0x2f5   :  { %v235_v60 = vsel %vm234_vm8, %v788_v53, %v231_v57 }
 0x2f6   :  { %v240_v63 = vsel %vm237_vm9, %v239_v61, %v235_v60 }
 0x2f7   :  { %v243_v1 = vmul.f32 %v240_v63, %v188_v35  ;;  %v41_v35 = vld [vmem:[%s1163_s0 + $0x18] sm:$0xff] }
 0x2f8   :  { %741 = vmatmul.msk.f32.gmra.mxu0 %vm52_vm0, %v41_v35 }
 0x33c   :  { %v246_v62 = vpop.permute.xlu2 %245 }
 0x33d   :  { %v248_v0 = vmul.f32 %v246_v62, %v240_v63 }
 0x33f   :  { %250 = vrot.lane.b32.xlu0 %v248_v0, %s916_s13 }
 0x375   :  { %v103_v39 = vpop.f32.mrf.mxu0 }
 0x376   :  { %v104_v40 = vadd.f32 %v1043_v11, %v103_v39 }
 0x3b1   :  { %v251_v2 = vpop.permute.xlu0 %250 }
 0x3b2   :  { %v253_v3 = vadd.f32 %v251_v2, %v243_v1 }
 0x3b4   :  { %789 = vtanh.f32 %v253_v3 }
 0x3ba   :  { %v790_v4 = vpop.eup %789 }
 0x3bb   :  { %256 = vrot.lane.b32.xlu1 %v790_v4, %s915_s30 }
 0x42d   :  { %v257_v5 = vpop.permute.xlu1 %256 }
 0x42e   :  { %v259_v6 = vmul.f32 %v257_v5, %v240_v63 }
 0x430   :  { %263 = vrot.lane.b32.xlu2 %v259_v6, %s916_s13 }
 0x48a   :  { %v264_v8 = vpop.permute.xlu2 %263 }
 0x48b   :  { %750 = vmatmul.msk.f32.vlgmr.msra.gmra.mxu3 %vm129_vm1, %v264_v8 }
 0x50e   :  { %v284_v13 = vpop.f32.mrf.mxu3 }
 0x50f   :  { %v287_v14 = vadd.f32 %v284_v13, %v101_v12 }
 0x511   :  { %791 = vtanh.f32 %v287_v14  ;;  %v751_v16 = vmul.f32 -1.442695, %v287_v14 }
 0x513   :  { %793 = vpow2.f32 %v751_v16 }
 0x517   :  { %v792_v15 = vpop.eup %791 }
 0x518   :  { %310 = vrot.lane.b32.xlu0 %v792_v15, %s915_s30 }
 0x519   :  { %v794_v17 = vpop.eup %793 }
 0x51a   :  { %v291_v18 = vadd.f32 1.0, %v794_v17 }
 0x51c   :  { %795 = vrcp.f32 %v291_v18  ;;  %v303_v24 = vand.u32 2147483648, %v291_v18  ;;  %vm297_vm11 = vweird.f32 %v291_v18  ;;  %v301_v25 = vand.u32 2147483647, %v291_v18 }
 0x51e   :  { %v304_v27 = vor.u32 1.1754944e-38, %v303_v24  ;;  %vm302_vm13 = vcmp.eq.f32.partialorder %v301_v25, 8.507059e+37 }
 0x522   :  { %v796_v19 = vpop.eup %795 }
 0x523   :  { %v293_v20 = vmul.f32 %v796_v19, %v291_v18  ;;  %vm298_vm10 = vweird.f32 %v796_v19 }
 0x524   :  { %vm299_vm12 = vmor %vm297_vm11, %vm298_vm10 }
 0x525   :  { %v294_v21 = vsub.f32 1.0, %v293_v20 }
 0x527   :  { %v295_v22 = vmul.f32 %v796_v19, %v294_v21 }
 0x529   :  { %v296_v23 = vadd.f32 %v796_v19, %v295_v22 }
 0x52b   :  { %v300_v26 = vsel %vm299_vm12, %v796_v19, %v296_v23 }
 0x52c   :  { %v305_v29 = vsel %vm302_vm13, %v304_v27, %v300_v26 }
 0x52d   :  { %v308_v31 = vmul.f32 %v305_v29, %v253_v3  ;;  %v42_v3 = vld [vmem:[%s1163_s0 + $0x20] sm:$0xff]  ;;  %s917_s0 = smov 96  }
 0x52e   :  { %742 = vmatmul.msk.f32.gmra.mxu0 %vm52_vm0, %v42_v3 }
 0x58a   :  { %v311_v28 = vpop.permute.xlu0 %310 }
 0x58b   :  { %v313_v30 = vmul.f32 %v311_v28, %v305_v29 }
 0x58d   :  { %315 = vrot.lane.b32.xlu1 %v313_v30, %s916_s13 }
 0x5ab   :  { %v106_v5 = vpop.f32.mrf.mxu0 }
 0x5ac   :  { %v107_v6 = vadd.f32 %v1043_v11, %v106_v5 }
 0x5ff   :  { %v316_v32 = vpop.permute.xlu1 %315 }
 0x600   :  { %v318_v33 = vadd.f32 %v316_v32, %v308_v31 }
 0x602   :  { %797 = vtanh.f32 %v318_v33 }
 0x608   :  { %v798_v34 = vpop.eup %797 }
 0x609   :  { %321 = vrot.lane.b32.xlu2 %v798_v34, %s915_s30  ;;  %v110_v34 = vadd.f32 %v1043_v11, %v1038_v9 }
 0x663   :  { %v322_v36 = vpop.permute.xlu2 %321 }
 0x664   :  { %v324_v37 = vmul.f32 %v322_v36, %v305_v29 }
 0x666   :  { %328 = vrot.lane.b32.xlu0 %v324_v37, %s916_s13 }
 0x6d8   :  { %v329_v38 = vpop.permute.xlu0 %328 }
 0x6d9   :  { %752 = vmatmul.msk.f32.vlgmr.msra.gmra.mxu1 %vm129_vm1, %v329_v38 }
 0x756   :  { %v349_v41 = vpop.f32.mrf.mxu1 }
 0x757   :  { %v352_v42 = vadd.f32 %v349_v41, %v104_v40 }
 0x759   :  { %799 = vtanh.f32 %v352_v42  ;;  %v753_v46 = vmul.f32 -1.442695, %v352_v42 }
 0x75b   :  { %801 = vpow2.f32 %v753_v46 }
 0x75f   :  { %v800_v45 = vpop.eup %799 }
 0x760   :  { %375 = vrot.lane.b32.xlu1 %v800_v45, %s915_s30 }
 0x761   :  { %v802_v47 = vpop.eup %801 }
 0x762   :  { %v356_v48 = vadd.f32 1.0, %v802_v47 }
 0x764   :  { %803 = vrcp.f32 %v356_v48  ;;  %v368_v54 = vand.u32 2147483648, %v356_v48  ;;  %vm362_vm15 = vweird.f32 %v356_v48  ;;  %v366_v55 = vand.u32 2147483647, %v356_v48 }
 0x766   :  { %v369_v57 = vor.u32 1.1754944e-38, %v368_v54  ;;  %vm367_vm3 = vcmp.eq.f32.partialorder %v366_v55, 8.507059e+37 }
 0x76a   :  { %v804_v49 = vpop.eup %803 }
 0x76b   :  { %v358_v50 = vmul.f32 %v804_v49, %v356_v48  ;;  %vm363_vm14 = vweird.f32 %v804_v49 }
 0x76c   :  { %vm364_vm2 = vmor %vm362_vm15, %vm363_vm14 }
 0x76d   :  { %v359_v51 = vsub.f32 1.0, %v358_v50 }
 0x76f   :  { %v360_v52 = vmul.f32 %v804_v49, %v359_v51 }
 0x771   :  { %v361_v53 = vadd.f32 %v804_v49, %v360_v52 }
 0x773   :  { %v365_v56 = vsel %vm364_vm2, %v804_v49, %v361_v53 }
 0x774   :  { %v370_v59 = vsel %vm367_vm3, %v369_v57, %v365_v56 }
 0x775   :  { %v373_v61 = vmul.f32 %v370_v59, %v318_v33 }
 0x7d2   :  { %v376_v58 = vpop.permute.xlu1 %375 }
 0x7d3   :  { %v378_v60 = vmul.f32 %v376_v58, %v370_v59 }
 0x7d5   :  { %380 = vrot.lane.b32.xlu2 %v378_v60, %s916_s13 }
 0x82f   :  { %v381_v62 = vpop.permute.xlu2 %380 }
 0x830   :  { %v383_v63 = vadd.f32 %v381_v62, %v373_v61  ;;  %v113_v61 = vadd.f32 %v1043_v11, %v1075_v43 }
 0x832   :  { %805 = vtanh.f32 %v383_v63 }
 0x838   :  { %v806_v0 = vpop.eup %805 }
 0x839   :  { %386 = vrot.lane.b32.xlu0 %v806_v0, %s915_s30 }
 0x8ab   :  { %v387_v1 = vpop.permute.xlu0 %386 }
 0x8ac   :  { %v389_v2 = vmul.f32 %v387_v1, %v370_v59 }
 0x8ae   :  { %393 = vrot.lane.b32.xlu1 %v389_v2, %s916_s13 }
 0x920   :  { %v394_v4 = vpop.permute.xlu1 %393 }
 0x921   :  { %754 = vmatmul.msk.f32.vlgmr.msra.gmra.mxu2 %vm129_vm1, %v394_v4 }
 0x9a4   :  { %v414_v7 = vpop.f32.mrf.mxu2 }
 0x9a5   :  { %v417_v8 = vadd.f32 %v414_v7, %v107_v6 }
 0x9a7   :  { %807 = vtanh.f32 %v417_v8  ;;  %v755_v12 = vmul.f32 -1.442695, %v417_v8 }
 0x9a9   :  { %809 = vpow2.f32 %v755_v12 }
 0x9ad   :  { %v808_v10 = vpop.eup %807 }
 0x9ae   :  { %440 = vrot.lane.b32.xlu2 %v808_v10, %s915_s30 }
 0x9af   :  { %v810_v13 = vpop.eup %809 }
 0x9b0   :  { %v421_v14 = vadd.f32 1.0, %v810_v13 }
 0x9b2   :  { %811 = vrcp.f32 %v421_v14  ;;  %v433_v20 = vand.u32 2147483648, %v421_v14  ;;  %vm427_vm5 = vweird.f32 %v421_v14  ;;  %v431_v21 = vand.u32 2147483647, %v421_v14 }
 0x9b4   :  { %v434_v23 = vor.u32 1.1754944e-38, %v433_v20  ;;  %vm432_vm7 = vcmp.eq.f32.partialorder %v431_v21, 8.507059e+37 }
 0x9b8   :  { %v812_v15 = vpop.eup %811 }
 0x9b9   :  { %v423_v16 = vmul.f32 %v812_v15, %v421_v14  ;;  %vm428_vm4 = vweird.f32 %v812_v15 }
 0x9ba   :  { %vm429_vm6 = vmor %vm427_vm5, %vm428_vm4 }
 0x9bb   :  { %v424_v17 = vsub.f32 1.0, %v423_v16 }
 0x9bd   :  { %v425_v18 = vmul.f32 %v812_v15, %v424_v17 }
 0x9bf   :  { %v426_v19 = vadd.f32 %v812_v15, %v425_v18 }
 0x9c1   :  { %v430_v22 = vsel %vm429_vm6, %v812_v15, %v426_v19 }
 0x9c2   :  { %v435_v25 = vsel %vm432_vm7, %v434_v23, %v430_v22 }
 0x9c3   :  { %v438_v27 = vmul.f32 %v435_v25, %v383_v63 }
 0xa08   :  { %v441_v24 = vpop.permute.xlu2 %440 }
 0xa09   :  { %v443_v26 = vmul.f32 %v441_v24, %v435_v25  ;;  %v116_v24 = vadd.f32 %v1043_v11, %v1077_v44 }
 0xa0b   :  { %445 = vrot.lane.b32.xlu0 %v443_v26, %s916_s13 }
 0xa7d   :  { %v446_v28 = vpop.permute.xlu0 %445 }
 0xa7e   :  { %v448_v29 = vadd.f32 %v446_v28, %v438_v27 }
 0xa80   :  { %813 = vtanh.f32 %v448_v29 }
 0xa86   :  { %v814_v30 = vpop.eup %813 }
 0xa87   :  { %451 = vrot.lane.b32.xlu1 %v814_v30, %s915_s30 }
 0xaf9   :  { %v452_v31 = vpop.permute.xlu1 %451 }
 0xafa   :  { %v454_v32 = vmul.f32 %v452_v31, %v435_v25 }
 0xafc   :  { %458 = vrot.lane.b32.xlu2 %v454_v32, %s916_s13 }
 0xb56   :  { %v459_v33 = vpop.permute.xlu2 %458 }
 0xb57   :  { %756 = vmatmul.msk.f32.vlgmr.msrb.gmra.mxu3 %vm129_vm1, %v459_v33 }
 0xbda   :  { %v479_v35 = vpop.f32.mrf.mxu3 }
 0xbdb   :  { %v482_v36 = vadd.f32 %v479_v35, %v110_v34 }
 0xbdd   :  { %815 = vtanh.f32 %v482_v36  ;;  %v757_v38 = vmul.f32 -1.442695, %v482_v36 }
 0xbdf   :  { %817 = vpow2.f32 %v757_v38 }
 0xbe3   :  { %v816_v37 = vpop.eup %815 }
 0xbe4   :  { %505 = vrot.lane.b32.xlu0 %v816_v37, %s915_s30 }
 0xbe5   :  { %v818_v39 = vpop.eup %817 }
 0xbe6   :  { %v486_v40 = vadd.f32 1.0, %v818_v39 }
 0xbe8   :  { %819 = vrcp.f32 %v486_v40  ;;  %v498_v48 = vand.u32 2147483648, %v486_v40  ;;  %vm492_vm9 = vweird.f32 %v486_v40  ;;  %v496_v9 = vand.u32 2147483647, %v486_v40 }
 0xbea   :  { %v499_v50 = vor.u32 1.1754944e-38, %v498_v48  ;;  %vm497_vm11 = vcmp.eq.f32.partialorder %v496_v9, 8.507059e+37  ;;  %v662_v48 = vld [vmem:[%s1167_s4 + $0x10] sm:$0xff]  ;;  %v661_v9 = vld [vmem:[%s1167_s4 + $0x8] sm:$0xff] }
 0xbee   :  { %v820_v41 = vpop.eup %819 }
 0xbef   :  { %v488_v42 = vmul.f32 %v820_v41, %v486_v40  ;;  %vm493_vm8 = vweird.f32 %v820_v41 }
 0xbf0   :  { %vm494_vm10 = vmor %vm492_vm9, %vm493_vm8 }
 0xbf1   :  { %v489_v45 = vsub.f32 1.0, %v488_v42 }
 0xbf3   :  { %v490_v46 = vmul.f32 %v820_v41, %v489_v45 }
 0xbf5   :  { %v491_v47 = vadd.f32 %v820_v41, %v490_v46 }
 0xbf7   :  { %v495_v49 = vsel %vm494_vm10, %v820_v41, %v491_v47  ;;  %v663_v47 = vld [vmem:[%s1167_s4 + $0x18] sm:$0xff] }
 0xbf8   :  { %v500_v52 = vsel %vm497_vm11, %v499_v50, %v495_v49  ;;  %682 = vmatpush.msra.mxu3 %v663_v47  ;;  %v660_v49 = vld [vmem:[%s1167_s4] sm:$0xff]  ;;  %s709_s4 = sshll.u32 %s1172_s9, 4  ;;  %s710_s4 = int_to_ptr.hbm [resolvable:$true] %s709_s4 }
 0xbf9   :  { %v503_v54 = vmul.f32 %v500_v52, %v448_v29 }
 0xbfa   :  { %683 = vmatpush.msra.mxu3 %v662_v48 }
 0xbfc   :  { %684 = vmatpush.msra.mxu3 %v661_v9 }
 0xbfe   :  { %685 = vmatpush.msra.mxu3 %v660_v49 }
 0xc56   :  { %v506_v51 = vpop.permute.xlu0 %505 }
 0xc57   :  { %v508_v53 = vmul.f32 %v506_v51, %v500_v52 }
 0xc59   :  { %510 = vrot.lane.b32.xlu1 %v508_v53, %s916_s13 }
 0xccb   :  { %v511_v55 = vpop.permute.xlu1 %510 }
 0xccc   :  { %v513_v56 = vadd.f32 %v511_v55, %v503_v54  ;;  %v774_v54 = vld [vmem:[%s1168_s5] ss:$0 sm:$0xff] }
 0xcce   :  { %821 = vtanh.f32 %v513_v56 }
 0xcd4   :  { %v822_v57 = vpop.eup %821 }
 0xcd5   :  { %516 = vrot.lane.b32.xlu2 %v822_v57, %s915_s30 }
 0xd2f   :  { %v517_v58 = vpop.permute.xlu2 %516 }
 0xd30   :  { %v519_v59 = vmul.f32 %v517_v58, %v500_v52 }
 0xd32   :  { %523 = vrot.lane.b32.xlu0 %v519_v59, %s916_s13 }
 0xda4   :  { %v524_v60 = vpop.permute.xlu0 %523 }
 0xda5   :  { %758 = vmatmul.msk.f32.vlgmr.msrb.gmra.mxu1 %vm129_vm1, %v524_v60 }
 0xe22   :  { %v544_v62 = vpop.f32.mrf.mxu1 }
 0xe23   :  { %v547_v63 = vadd.f32 %v544_v62, %v113_v61 }
 0xe25   :  { %823 = vtanh.f32 %v547_v63  ;;  %v759_v1 = vmul.f32 -1.442695, %v547_v63 }
 0xe27   :  { %825 = vpow2.f32 %v759_v1 }
 0xe2b   :  { %v824_v0 = vpop.eup %823 }
 0xe2c   :  { %570 = vrot.lane.b32.xlu1 %v824_v0, %s915_s30 }
 0xe2d   :  { %v826_v2 = vpop.eup %825 }
 0xe2e   :  { %v551_v3 = vadd.f32 1.0, %v826_v2 }
 0xe30   :  { %827 = vrcp.f32 %v551_v3  ;;  %v563_v10 = vand.u32 2147483648, %v551_v3  ;;  %vm557_vm13 = vweird.f32 %v551_v3  ;;  %v561_v43 = vand.u32 2147483647, %v551_v3 }
 0xe32   :  { %v564_v13 = vor.u32 1.1754944e-38, %v563_v10  ;;  %vm562_vm15 = vcmp.eq.f32.partialorder %v561_v43, 8.507059e+37 }
 0xe36   :  { %v828_v4 = vpop.eup %827 }
 0xe37   :  { %v553_v5 = vmul.f32 %v828_v4, %v551_v3  ;;  %vm558_vm12 = vweird.f32 %v828_v4 }
 0xe38   :  { %vm559_vm14 = vmor %vm557_vm13, %vm558_vm12 }
 0xe39   :  { %v554_v6 = vsub.f32 1.0, %v553_v5 }
 0xe3b   :  { %v555_v7 = vmul.f32 %v828_v4, %v554_v6 }
 0xe3d   :  { %v556_v8 = vadd.f32 %v828_v4, %v555_v7 }
 0xe3f   :  { %v560_v12 = vsel %vm559_vm14, %v828_v4, %v556_v8 }
 0xe40   :  { %v565_v15 = vsel %vm562_vm15, %v564_v13, %v560_v12 }
 0xe41   :  { %v568_v17 = vmul.f32 %v565_v15, %v513_v56 }
 0xe9e   :  { %v571_v14 = vpop.permute.xlu1 %570 }
 0xe9f   :  { %v573_v16 = vmul.f32 %v571_v14, %v565_v15 }
 0xea1   :  { %575 = vrot.lane.b32.xlu2 %v573_v16, %s916_s13 }
 0xefb   :  { %v576_v18 = vpop.permute.xlu2 %575 }
 0xefc   :  { %v578_v19 = vadd.f32 %v576_v18, %v568_v17 }
 0xefe   :  { %829 = vtanh.f32 %v578_v19 }
 0xf04   :  { %v830_v20 = vpop.eup %829 }
 0xf05   :  { %581 = vrot.lane.b32.xlu0 %v830_v20, %s915_s30 }
 0xf77   :  { %v582_v21 = vpop.permute.xlu0 %581 }
 0xf78   :  { %v584_v22 = vmul.f32 %v582_v21, %v565_v15 }
 0xf7a   :  { %588 = vrot.lane.b32.xlu1 %v584_v22, %s916_s13 }
 0xfec   :  { %v589_v23 = vpop.permute.xlu1 %588 }
 0xfed   :  { %760 = vmatmul.msk.f32.vlgmr.msrb.gmra.mxu2 %vm129_vm1, %v589_v23 }
0x1070   :  { %v609_v25 = vpop.f32.mrf.mxu2 }
0x1071   :  { %v612_v26 = vadd.f32 %v609_v25, %v116_v24 }
0x1073   :  { %831 = vtanh.f32 %v612_v26  ;;  %v761_v28 = vmul.f32 -1.442695, %v612_v26 }
0x1075   :  { %833 = vpow2.f32 %v761_v28 }
0x1079   :  { %v832_v27 = vpop.eup %831 }
0x107a   :  { %635 = vrot.lane.b32.xlu2 %v832_v27, %s915_s30 }
0x107b   :  { %v834_v29 = vpop.eup %833 }
0x107c   :  { %v616_v30 = vadd.f32 1.0, %v834_v29 }
0x107e   :  { %835 = vrcp.f32 %v616_v30  ;;  %v628_v36 = vand.u32 2147483648, %v616_v30  ;;  %vm622_vm3 = vweird.f32 %v616_v30  ;;  %v626_v11 = vand.u32 2147483647, %v616_v30 }
0x1080   :  { %v629_v37 = vor.u32 1.1754944e-38, %v628_v36  ;;  %vm627_vm5 = vcmp.eq.f32.partialorder %v626_v11, 8.507059e+37 }
0x1084   :  { %v836_v31 = vpop.eup %835 }
0x1085   :  { %v618_v32 = vmul.f32 %v836_v31, %v616_v30  ;;  %vm623_vm2 = vweird.f32 %v836_v31 }
0x1086   :  { %vm624_vm4 = vmor %vm622_vm3, %vm623_vm2 }
0x1087   :  { %v619_v33 = vsub.f32 1.0, %v618_v32 }
0x1089   :  { %v620_v34 = vmul.f32 %v836_v31, %v619_v33 }
0x108b   :  { %v621_v35 = vadd.f32 %v836_v31, %v620_v34 }
0x108d   :  { %v625_v44 = vsel %vm624_vm4, %v836_v31, %v621_v35 }
0x108e   :  { %v630_v39 = vsel %vm627_vm5, %v629_v37, %v625_v44 }
0x108f   :  { %v633_v41 = vmul.f32 %v630_v39, %v578_v19 }
0x10d4   :  { %v636_v38 = vpop.permute.xlu2 %635 }
0x10d5   :  { %v638_v40 = vmul.f32 %v636_v38, %v630_v39 }
0x10d7   :  { %640 = vrot.lane.b32.xlu0 %v638_v40, %s916_s13 }
0x1149   :  { %v641_v42 = vpop.permute.xlu0 %640 }
0x114a   :  { %v643_v45 = vadd.f32 %v641_v42, %v633_v41 }
0x114c   :  { %837 = vtanh.f32 %v643_v45  ;;  %656 = vrot.lane.b32.xlu0 %v643_v45, %s917_s0 }
0x1152   :  { %v838_v46 = vpop.eup %837 }
0x1153   :  { %646 = vrot.lane.b32.xlu1 %v838_v46, %s915_s30  ;;  %s707_s30 = sshll.u32 %s918_s6, 4  ;;  %s708_s30 = int_to_ptr.vmem [resolvable:$true] %s707_s30 }
0x11be   :  { %v657_v50 = vpop.permute.xlu0 %656 }
0x11bf   :  { %659 = vst.msk [vmem:[#allocation7] sm:$0xff] %vm129_vm1, %v657_v50 }
0x11c5   :  { %v647_v51 = vpop.permute.xlu1 %646 }
0x11c6   :  { %v649_v52 = vmul.f32 %v647_v51, %v630_v39 }
0x11c8   :  { %651 = vrot.lane.b32.xlu2 %v649_v52, %s916_s13  ;;  %s720_s13 = sshll.u32 %s1173_s10, 4  ;;  %s721_s13 = int_to_ptr.hbm [resolvable:$true] %s720_s13 }
0x1222   :  { %v652_v53 = vpop.permute.xlu2 %651 }
0x1223   :  { %654 = vst.msk [vmem:[#allocation5] sm:$0xff] %vm129_vm1, %v652_v53  ;;  %762 = vmatmul.msk.f32.vlgmr.msra.gmra.mxu3 %vm129_vm1, %v652_v53 }
0x1224   :  { %712 = dma.vmem_to_hbm [thread:$0]  %s708_s30, 128, %s710_s4, [#allocation6]  }
0x1225   :  { %723 = dma.vmem_to_hbm [thread:$0]  %s719_s7, 128, %s721_s13, [#allocation6]  }
0x12a6   :  { %v687_v55 = vpop.f32.mrf.mxu3 }
0x12a7   :  { %v688_v56 = vadd.f32 %v774_v54, %v687_v55 }
0x12a9   :  { %690 = vst.msk [vmem:[#allocation3] sm:$0xff] %vm52_vm0, %v688_v56 }
0x12aa   :  { %701 = dma.vmem_to_hbm [thread:$0]  %s697_s19, 128, %s699_s21, [#allocation4]  }
0x12ab   :  { %911 = dma.done.wait [#allocation4], 128  }
0x12ac   :  { %912 = vsyncadd [#allocation4], 4294967168 }
0x12ad   :  { %913 = dma.done.wait [#allocation6], 256  }
0x12ae   :  { %914 = vsyncadd [#allocation6], 4294967040 }
0x12af   :  { %736 = vsyncpa [#allocation4], 1 }
0x12b0   :  { %737 = vsyncpa [#allocation6], 1 }

</bundles_post_ra>
